<compile_context>
chip_gen: v7x
topology: tpu7x:2x2x1
jax: 0.10.0
libtpu: 0.0.40
codegen_flags: <defaults>
</compile_context>

<pallas_src>
import jax
import jax.numpy as jnp
import numpy as np
from jax.experimental import pallas as pl
from jax.experimental.pallas import tpu as pltpu

NEG_SLOPE = 0.2            # torch.nn.LeakyReLU(negative_slope=0.2)
LANE = 128                 # lane-dense padded output width
F32 = jnp.float32
BF16 = jnp.bfloat16
VMEM_LIMIT = 32 * 1024 * 1024          # raise v5e's 16 MiB scoped default
RESIDENT_SLAB_BUDGET = 8 * 1024 * 1024  # efi+efo resident (incl. dbl buffers)


def _leaky(h):
    return jnp.where(h > 0, h, NEG_SLOPE * h)


def _round_up(n, m):
    return ((n + m - 1) // m) * m


def _pick_edge_tile(n, desired):
    """Edge tile: `desired` (multiple of 128), or the full 8-rounded row count
    for small inputs (then the tile equals the padded dim -> always legal)."""
    n8 = _round_up(max(n, 1), 8)
    return n8 if desired >= n8 else desired


def _pick_node_tile(n, desired):
    """Node tile (multiple of 16 for bf16 blocks); guarantee >=2 tiles when the
    graph allows so both v7x TensorCores get work on the 'parallel' axis."""
    n16 = _round_up(max(n, 1), 16)
    if n16 >= 2 * desired:
        return desired
    if n16 >= 32:
        return _round_up(n16 // 2, 16)
    return n16


def _pad_rows(x, n_pad):
    pad = n_pad - x.shape[0]
    return x if pad == 0 else jnp.pad(x, ((0, pad), (0, 0)))


def _pad_cols(x, n_pad):
    pad = n_pad - x.shape[1]
    return x if pad == 0 else jnp.pad(x, ((0, 0), (0, pad)))


# ----------------------------------------------------------------------------
# Kernel 1: fused MLP (Linear + LeakyReLU between layers, last layer raw).
# Row axis tiled ("parallel"); bf16 weights, bf16 MXU inputs, f32 accumulate.
# Caller pads the last layer to 128 output columns (lane-dense bf16 store).
# ----------------------------------------------------------------------------
def mlp_pallas(x, params, tile_rows):
    n_rows, d_in = x.shape
    n_layers = len(params)
    d_out = params[-1][0].shape[1]
    assert n_rows % tile_rows == 0

    def kernel(*refs):
        x_ref = refs[0]
        w_refs = refs[1:1 + n_layers]
        b_refs = refs[1 + n_layers:1 + 2 * n_layers]
        out_ref = refs[-1]
        h = x_ref[...]
        for i in range(n_layers):
            h = jnp.dot(h.astype(BF16), w_refs[i][...],
                        preferred_element_type=F32) + b_refs[i][...]
            if i < n_layers - 1:
                h = _leaky(h)
        out_ref[...] = h.astype(out_ref.dtype)

    in_specs = [pl.BlockSpec((tile_rows, d_in), lambda i: (i, 0))]
    in_specs += [pl.BlockSpec(W.shape, lambda i: (0, 0)) for W, _ in params]
    in_specs += [pl.BlockSpec(b.shape, lambda i: (0, 0)) for _, b in params]

    return pl.pallas_call(
        kernel,
        grid=(n_rows // tile_rows,),
        in_specs=in_specs,
        out_specs=pl.BlockSpec((tile_rows, d_out), lambda i: (i, 0)),
        out_shape=jax.ShapeDtypeStruct((n_rows, d_out), BF16),
        compiler_params=pltpu.CompilerParams(
            dimension_semantics=("parallel",),
            vmem_limit_bytes=VMEM_LIMIT),
    )(x, *[W for W, _ in params], *[b for _, b in params])


# ----------------------------------------------------------------------------
# Kernel 2: edge_msg_o — MLP_msg_i2o, single padded 128-wide last-layer matmul,
# sigmoid gate (EUP exp + approx reciprocal), gated lane-dense bf16 slab:
#   columns [0:h1)        = efo1 = f1 * sigmoid(k)
#   columns [h1:h1+h2)    = efo2 = f2 * sigmoid(k)
#   column  gate_col      = gated logit (unused)
#   column  gate_col + 1  = sigmoid(k)            (in-degree indicator, >0)
# ----------------------------------------------------------------------------
def edge_msg_o_pallas(x, hidden, W_last_pad, b_last_pad, gate_col, tile_rows):
    n_rows, d_in = x.shape
    n_hidden = len(hidden)
    d_out = W_last_pad.shape[1]
    assert n_rows % tile_rows == 0

    def kernel(*refs):
        x_ref = refs[0]
        w_refs = refs[1:1 + n_hidden]
        b_refs = refs[1 + n_hidden:1 + 2 * n_hidden]
        wl_ref = refs[1 + 2 * n_hidden]
        bl_ref = refs[2 + 2 * n_hidden]
        out_ref = refs[-1]
        h = x_ref[...]
        for i in range(n_hidden):
            h = _leaky(jnp.dot(h.astype(BF16), w_refs[i][...],
                               preferred_element_type=F32) + b_refs[i][...])
        y = jnp.dot(h.astype(BF16), wl_ref[...],
                    preferred_element_type=F32) + bl_ref[...]
        kz = y[:, gate_col:gate_col + 1]
        # sigmoid: exp and approx reciprocal both land on the EUP slot.
        gate = pl.reciprocal(1.0 + jnp.exp(-kz), approx=True)
        out_ref[...] = (y * gate).astype(out_ref.dtype)   # lane-dense bf16 store

    args = ([x] + [W for W, _ in hidden] + [b for _, b in hidden]
            + [W_last_pad, b_last_pad])
    in_specs = [pl.BlockSpec((tile_rows, d_in), lambda i: (i, 0))]
    in_specs += [pl.BlockSpec(a.shape, lambda i: (0, 0)) for a in args[1:]]

    return pl.pallas_call(
        kernel,
        grid=(n_rows // tile_rows,),
        in_specs=in_specs,
        out_specs=pl.BlockSpec((tile_rows, d_out), lambda i: (i, 0)),
        out_shape=jax.ShapeDtypeStruct((n_rows, d_out), BF16),
        compiler_params=pltpu.CompilerParams(
            dimension_semantics=("parallel",),
            vmem_limit_bytes=VMEM_LIMIT),
    )(*args)


# ----------------------------------------------------------------------------
# Kernel 3: fused aggregation + node_reduce_o.
#   grid = (node tiles [parallel], edge tiles [arbitrary reduction])
#   per edge tile:   base += A_out @ efi    (fn.sum 'efi'  -> new_nf base)
#                    sum  += A_in  @ efo    (fn.sum 'efo1' -> nfo1; deg column)
#                    max   = masked max, chunked to stay inside the vreg file
#   last edge tile:  nfo2 zero-filled for isolated nodes (DGL semantics),
#                    MLP_reduce_o applied (first layer split by input rows, so
#                    no in-kernel concat), output-node select vs. base.
# efi/efo may be VMEM-resident full slabs (fetched once, sliced per edge tile).
# ----------------------------------------------------------------------------
def aggregate_reduce_pallas(A_out, efi, A_in, efo, efo2_t, nf, out_mask,
                            w0_parts, b0, mid_params, W_last_pad, b_last_pad,
                            h1, h2, deg_col, tile_n, tile_e, resident):
    N_pad, E_pad = A_out.shape
    in_nf = nf.shape[1]
    d_slab = efo.shape[1]
    d_out = W_last_pad.shape[1]
    n_mid = len(mid_params)
    assert N_pad % tile_n == 0 and E_pad % tile_e == 0
    w0a, w0b, w0c = w0_parts

    # masked-max edge chunk: keep each (tile_n, chunk) f32 candidate <= ~128 KiB
    e_chunk = max(128, ((128 * 1024) // (tile_n * 4)) // 128 * 128)
    e_chunk = min(e_chunk, tile_e)
    align = tile_e if tile_e % 128 == 0 else 8

    def kernel(*refs):
        (a_out_ref, efi_ref, a_in_ref, efo_ref, efo2t_ref,
         nf_ref, mask_ref, w0a_ref, w0b_ref, w0c_ref, b0_ref) = refs[:11]
        mid_refs = refs[11:11 + 2 * n_mid]
        wl_ref = refs[11 + 2 * n_mid]
        bl_ref = refs[12 + 2 * n_mid]
        out_ref = refs[13 + 2 * n_mid]
        base_acc, sum_acc, max_acc = refs[14 + 2 * n_mid:]

        k = pl.program_id(1)

        @pl.when(k == 0)
        def _init():
            base_acc[...] = jnp.zeros_like(base_acc)
            sum_acc[...] = jnp.zeros_like(sum_acc)
            max_acc[...] = jnp.full_like(max_acc, -jnp.inf)

        # efi/efo: resident full slabs are sliced per edge tile; streamed blocks
        # are already the (tile_e, 128) tile.
        if resident:
            e0 = pl.multiple_of(k * tile_e, align)
            efi_t = efi_ref[pl.ds(e0, tile_e), :]
            efo_t = efo_ref[pl.ds(e0, tile_e), :]
        else:
            efi_t = efi_ref[...]
            efo_t = efo_ref[...]

        # fn.sum('efi') and fn.sum('efo1') as bf16 MXU matmuls, f32 accumulate.
        base_acc[...] += jnp.dot(a_out_ref[...], efi_t,
                                 preferred_element_type=F32)
        sum_acc[...] += jnp.dot(a_in_ref[...], efo_t,
                                preferred_element_type=F32)

        # fn.max('efo2'): vectorised masked max, chunked along the edge axis so
        # each (tile_n, chunk) candidate stays inside the vreg file (no spill).
        for c0 in range(0, tile_e, e_chunk):
            w = min(e_chunk, tile_e - c0)
            m_c = a_in_ref[:, c0:c0 + w] > 0              # (tile_n, w) mask
            cols = []
            for f in range(h2):
                row = efo2t_ref[f:f + 1, c0:c0 + w].astype(F32)   # (1, w)
                cand = jnp.where(m_c, row, float("-inf"))         # (tile_n, w)
                cols.append(jnp.max(cand, axis=-1, keepdims=True))
            chunk_max = jnp.concatenate(cols, axis=-1)            # (tile_n, h2)
            max_acc[...] = jnp.maximum(max_acc[...], chunk_max)

        @pl.when(k == pl.num_programs(1) - 1)
        def _finalize():
            nfo1 = sum_acc[:, :h1]
            # in-degree indicator rides in the deg_col column of the efo slab
            has_in = sum_acc[:, deg_col:deg_col + 1] > 0.0
            nfo2 = jnp.where(has_in, max_acc[...], 0.0)
            # MLP_reduce_o, first layer split by input rows (no lane concat).
            h = (jnp.dot(nf_ref[...].astype(BF16), w0a_ref[...],
                         preferred_element_type=F32)
                 + jnp.dot(nfo1.astype(BF16), w0b_ref[...],
                           preferred_element_type=F32)
                 + jnp.dot(nfo2.astype(BF16), w0c_ref[...],
                           preferred_element_type=F32)
                 + b0_ref[...])
            h = _leaky(h)
            for i in range(n_mid):
                h = _leaky(jnp.dot(h.astype(BF16), mid_refs[2 * i][...],
                                   preferred_element_type=F32)
                           + mid_refs[2 * i + 1][...])
            red = jnp.dot(h.astype(BF16), wl_ref[...],
                          preferred_element_type=F32) + bl_ref[...]
            # apply_nodes(output_nodes): non-output nodes keep the net_out sum.
            out_ref[...] = jnp.where(mask_ref[...] > 0.5, red, base_acc[...])

    if resident:
        efi_spec = pl.BlockSpec((E_pad, d_slab), lambda i, k: (0, 0))
        efo_spec = pl.BlockSpec((E_pad, d_slab), lambda i, k: (0, 0))
    else:
        efi_spec = pl.BlockSpec((tile_e, d_slab), lambda i, k: (k, 0))
        efo_spec = pl.BlockSpec((tile_e, d_slab), lambda i, k: (k, 0))

    mid_flat = []
    for W, b in mid_params:
        mid_flat += [W, b]
    args = [A_out, efi, A_in, efo, efo2_t, nf, out_mask,
            w0a, w0b, w0c, b0] + mid_flat + [W_last_pad, b_last_pad]

    # TODO(synk): mark the constant-index inputs with pipeline_mode=pl.Buffered(1)
    # once single-buffered pipelining is confirmed on the target jax version.
    in_specs = [
        pl.BlockSpec((tile_n, tile_e), lambda i, k: (i, k)),        # A_out
        efi_spec,                                                   # efi slab
        pl.BlockSpec((tile_n, tile_e), lambda i, k: (i, k)),        # A_in
        efo_spec,                                                   # efo slab
        pl.BlockSpec((h2, tile_e), lambda i, k: (0, k)),            # efo2^T
        pl.BlockSpec((tile_n, in_nf), lambda i, k: (i, 0)),         # nf
        pl.BlockSpec((tile_n, 1), lambda i, k: (i, 0)),             # out_mask
    ]
    in_specs += [pl.BlockSpec(a.shape, lambda i, k: (0, 0)) for a in args[7:]]

    return pl.pallas_call(
        kernel,
        grid=(N_pad // tile_n, E_pad // tile_e),
        in_specs=in_specs,
        out_specs=pl.BlockSpec((tile_n, d_out), lambda i, k: (i, 0)),
        out_shape=jax.ShapeDtypeStruct((N_pad, d_out), F32),
        scratch_shapes=[
            pltpu.VMEM((tile_n, d_out), F32),    # base_acc (new_nf sum)
            pltpu.VMEM((tile_n, d_slab), F32),   # sum_acc  (nfo1 + deg column)
            pltpu.VMEM((tile_n, h2), F32),       # max_acc  (nfo2)
        ],
        compiler_params=pltpu.CompilerParams(
            dimension_semantics=("parallel", "arbitrary"),
            vmem_limit_bytes=VMEM_LIMIT),
    )(*args)


# ----------------------------------------------------------------------------
# NetConv.forward
# ----------------------------------------------------------------------------
def netconv_forward(nf, ef_out, src_out, dst_out, ef_in, src_in, dst_in,
                    out_mask, params_o2i, params_i2o, params_red, h1, h2,
                    *, tile_n=256, tile_e=512):
    """tile_n multiple of 16, tile_e multiple of 128; both shrink automatically
    when the graph is smaller than one tile."""
    N, in_nf = nf.shape
    out_nf = params_o2i[-1][0].shape[1]
    E_out, E_in = ef_out.shape[0], ef_in.shape[0]

    assert h1 + h2 + 2 <= LANE
    gate_col = h1 + h2          # gated logit column (unused downstream)
    deg_col = h1 + h2 + 1       # sigmoid(k) per edge -> in-degree indicator

    te = _pick_edge_tile(max(E_out, E_in), tile_e)
    tn = _pick_node_tile(N, tile_n)
    E_pad = _round_up(max(E_out, E_in), te)
    N_pad = _round_up(N, tn)

    def bf(w):
        return w.astype(BF16)

    # ---- pad last layers to 128 lanes (lane-dense stores); weights -> bf16 --
    Wo, bo = params_o2i[-1]
    Wo_pad = jnp.zeros((Wo.shape[0], LANE), F32).at[:, :out_nf].set(Wo)
    bo_pad = jnp.zeros((1, LANE), F32).at[:, :out_nf].set(bo)
    p_o2i = [(bf(W), b) for W, b in params_o2i[:-1]] + [(bf(Wo_pad), bo_pad)]

    Wi, bi = params_i2o[-1]                 # (64, 1 + h1 + h2); col 0 = gate
    Wi_pad = (jnp.zeros((Wi.shape[0], LANE), F32)
              .at[:, :h1 + h2].set(Wi[:, 1:])
              .at[:, gate_col].set(Wi[:, 0]))
    bi_pad = (jnp.zeros((1, LANE), F32)
              .at[:, :h1 + h2].set(bi[:, 1:])
              .at[:, gate_col].set(bi[:, 0])
              .at[:, deg_col].set(1.0))     # column deg_col -> sigmoid(k) > 0
    p_i2o_hidden = [(bf(W), b) for W, b in params_i2o[:-1]]

    Wr0, br0 = params_red[0]
    w0_parts = (bf(Wr0[:in_nf]), bf(Wr0[in_nf:in_nf + h1]),
                bf(Wr0[in_nf + h1:]))
    mid_params = [(bf(W), b) for W, b in params_red[1:-1]]
    Wr_l, br_l = params_red[-1]
    Wr_l_pad = jnp.zeros((Wr_l.shape[0], LANE), F32).at[:, :out_nf].set(Wr_l)
    br_l_pad = jnp.zeros((1, LANE), F32).at[:, :out_nf].set(br_l)

    # ---- edge MLPs ----------------------------------------------------------
    # TODO(synk): fuse the nf[src]/nf[dst] row gather + concat into the edge
    # MLP kernels (scalar-prefetched index arrays) instead of materialising x_*.
    x_out = _pad_rows(jnp.concatenate([nf[src_out], nf[dst_out], ef_out], 1), E_pad)
    x_in = _pad_rows(jnp.concatenate([nf[src_in], nf[dst_in], ef_in], 1), E_pad)

    efi = mlp_pallas(x_out, p_o2i, tile_rows=te)                     # (E_pad,128) bf16
    efo = edge_msg_o_pallas(x_in, p_i2o_hidden, bf(Wi_pad), bi_pad,
                            gate_col, tile_rows=te)                  # (E_pad,128) bf16
    # TODO(synk): emit efo2^T as a second lane-dense output of edge_msg_o
    # (in-kernel XLU transpose) to drop this small XLA transpose for huge E.
    efo2_t = jnp.transpose(efo[:, h1:h1 + h2])                       # (h2, E_pad) bf16

    # ---- dense incidence, bf16 (0/1 exact; halves the dominant HBM stream) --
    # TODO(synk): for real graph sizes replace the dense N x E incidence matmul
    # with a scalar-prefetch scatter (dst indices in SMEM, segmented sum/max).
    A_out = _pad_cols((jnp.arange(N_pad)[:, None] == dst_out[None, :]).astype(BF16),
                      E_pad)
    A_in = _pad_cols((jnp.arange(N_pad)[:, None] == dst_in[None, :]).astype(BF16),
                     E_pad)

    nf_p = _pad_rows(nf, N_pad)
    mask_p = _pad_rows(out_mask, N_pad)

    # keep efi/efo VMEM-resident across the node axis when they fit the budget
    # (bytes: 2 slabs x bf16 x double buffer); safe on v7x's 64 MiB VMEM too.
    resident = (E_pad * LANE * 2) * 2 * 2 <= RESIDENT_SLAB_BUDGET

    new_nf = aggregate_reduce_pallas(
        A_out, efi, A_in, efo, efo2_t, nf_p, mask_p,
        w0_parts, br0, mid_params, bf(Wr_l_pad), br_l_pad,
        h1, h2, deg_col, tile_n=tn, tile_e=te, resident=resident)
    return new_nf[:N, :out_nf]


# ----------------------------------------------------------------------------
# Pure-JAX f32 reference (mirrors the DGL semantics) for correctness check.
# ----------------------------------------------------------------------------
def _mlp_ref(x, params):
    h = x
    for i, (W, b) in enumerate(params):
        h = h @ W + b[0]
        if i < len(params) - 1:
            h = _leaky(h)
    return h


def netconv_ref(nf, ef_out, src_out, dst_out, ef_in, src_in, dst_in,
                out_mask, p_o2i, p_i2o, p_red, h1, h2):
    N = nf.shape[0]
    efi = _mlp_ref(jnp.concatenate([nf[src_out], nf[dst_out], ef_out], 1), p_o2i)
    base = jax.ops.segment_sum(efi, dst_out, num_segments=N)
    y = _mlp_ref(jnp.concatenate([nf[src_in], nf[dst_in], ef_in], 1), p_i2o)
    k = 1.0 / (1.0 + jnp.exp(-y[:, :1]))
    efo1 = y[:, 1:1 + h1] * k
    efo2 = y[:, 1 + h1:1 + h1 + h2] * k
    nfo1 = jax.ops.segment_sum(efo1, dst_in, num_segments=N)
    nfo2 = jax.ops.segment_max(efo2, dst_in, num_segments=N)
    has = jax.ops.segment_sum(jnp.ones(dst_in.shape, jnp.float32), dst_in,
                              num_segments=N) > 0
    nfo2 = jnp.where(has[:, None], nfo2, 0.0)
    red = _mlp_ref(jnp.concatenate([nf, nfo1, nfo2], 1), p_red)
    return jnp.where(out_mask > 0.5, red, base)


def init_mlp(key, sizes, scale=0.1):
    params = []
    for i in range(1, len(sizes)):
        key, k1, k2 = jax.random.split(key, 3)
        W = scale * jax.random.normal(k1, (sizes[i - 1], sizes[i]), jnp.float32)
        b = scale * jax.random.normal(k2, (1, sizes[i]), jnp.float32)
        params.append((W, b))
    return key, params


if __name__ == "__main__":
    in_nf, in_ef, out_nf, h1, h2 = 8, 8, 8, 32, 32
    N, E_out, E_in = 14, 24, 20   # non-multiples exercise the padding paths

    key = jax.random.PRNGKey(0)
    key, p_o2i = init_mlp(key, (2 * in_nf + in_ef, 64, 64, 64, 64, out_nf))
    key, p_i2o = init_mlp(key, (2 * in_nf + in_ef, 64, 64, 64, 1 + h1 + h2))
    key, p_red = init_mlp(key, (in_nf + h1 + h2, 64, 64, 64, out_nf))

    key, kn, keo, kei, ks1, kd1, ks2, kd2 = jax.random.split(key, 8)
    nf = jax.random.normal(kn, (N, in_nf), jnp.float32)
    ef_out = jax.random.normal(keo, (E_out, in_ef), jnp.float32)
    ef_in = jax.random.normal(kei, (E_in, in_ef), jnp.float32)
    src_out = jax.random.randint(ks1, (E_out,), 0, N)
    dst_out = jax.random.randint(kd1, (E_out,), 0, N)
    src_in = jax.random.randint(ks2, (E_in,), 0, N)
    dst_in = jax.random.randint(kd2, (E_in,), 0, N)
    # ts['output_nodes']: second half of the nodes are "output" nodes
    out_mask = (jnp.arange(N) >= N // 2).astype(jnp.float32)[:, None]

    out = netconv_forward(nf, ef_out, src_out, dst_out, ef_in, src_in, dst_in,
                          out_mask, p_o2i, p_i2o, p_red, h1, h2)
    out = jax.block_until_ready(out)

    ref = netconv_ref(nf, ef_out, src_out, dst_out, ef_in, src_in, dst_in,
                      out_mask, p_o2i, p_i2o, p_red, h1, h2)
    # Tolerance loosened vs. the f32 reference because (per perf review) the
    # kernels use bf16 MXU inputs with f32 accumulation and an approx (EUP)
    # reciprocal for the sigmoid gate; structural errors would be O(0.1+).
    np.testing.assert_allclose(np.asarray(out), np.asarray(ref),
                               rtol=3e-2, atol=1e-2)
    print("KERNEL_OK")
</pallas_src>

<mosaic_0001>
module attributes {stable_mosaic.version = 11 : i64} {
  func.func @kernel(%arg0: i32, %arg1: memref<24x24xf32, #tpu.memory_space<vmem>>, %arg2: memref<24x64xbf16, #tpu.memory_space<vmem>>, %arg3: memref<64x64xbf16, #tpu.memory_space<vmem>>, %arg4: memref<64x64xbf16, #tpu.memory_space<vmem>>, %arg5: memref<64x64xbf16, #tpu.memory_space<vmem>>, %arg6: memref<64x128xbf16, #tpu.memory_space<vmem>>, %arg7: memref<1x64xf32, #tpu.memory_space<vmem>>, %arg8: memref<1x64xf32, #tpu.memory_space<vmem>>, %arg9: memref<1x64xf32, #tpu.memory_space<vmem>>, %arg10: memref<1x64xf32, #tpu.memory_space<vmem>>, %arg11: memref<1x128xf32, #tpu.memory_space<vmem>>, %arg12: memref<24x128xbf16, #tpu.memory_space<vmem>>) attributes {dimension_semantics = [#tpu.dimension_semantics<parallel>], iteration_bounds = array<i64: 1>, scalar_prefetch = 0 : i64, scratch_operands = 0 : i64, tpu.core_type = #tpu.core_type<tc>, window_params = [{transform_indices = @transform_0, window_bounds = array<i64: 24, 24>}, {pipeline_mode = #tpu.pipeline_mode<synchronous>, transform_indices = @transform_1, window_bounds = array<i64: 24, 64>}, {pipeline_mode = #tpu.pipeline_mode<synchronous>, transform_indices = @transform_2, window_bounds = array<i64: 64, 64>}, {pipeline_mode = #tpu.pipeline_mode<synchronous>, transform_indices = @transform_3, window_bounds = array<i64: 64, 64>}, {pipeline_mode = #tpu.pipeline_mode<synchronous>, transform_indices = @transform_4, window_bounds = array<i64: 64, 64>}, {pipeline_mode = #tpu.pipeline_mode<synchronous>, transform_indices = @transform_5, window_bounds = array<i64: 64, 128>}, {pipeline_mode = #tpu.pipeline_mode<synchronous>, transform_indices = @transform_6, window_bounds = array<i64: 1, 64>}, {pipeline_mode = #tpu.pipeline_mode<synchronous>, transform_indices = @transform_7, window_bounds = array<i64: 1, 64>}, {pipeline_mode = #tpu.pipeline_mode<synchronous>, transform_indices = @transform_8, window_bounds = array<i64: 1, 64>}, {pipeline_mode = #tpu.pipeline_mode<synchronous>, transform_indices = @transform_9, window_bounds = array<i64: 1, 64>}, {pipeline_mode = #tpu.pipeline_mode<synchronous>, transform_indices = @transform_10, window_bounds = array<i64: 1, 128>}, {transform_indices = @transform_11, window_bounds = array<i64: 24, 128>}]} {
    %c0 = arith.constant 0 : index
    %c0_0 = arith.constant 0 : index
    %0 = vector.load %arg1[%c0, %c0_0] : memref<24x24xf32, #tpu.memory_space<vmem>>, vector<24x24xf32>
    %1 = arith.truncf %0 : vector<24x24xf32> to vector<24x24xbf16>
    %c0_1 = arith.constant 0 : index
    %c0_2 = arith.constant 0 : index
    %2 = vector.load %arg2[%c0_1, %c0_2] : memref<24x64xbf16, #tpu.memory_space<vmem>>, vector<24x64xbf16>
    %cst = arith.constant dense<0.000000e+00> : vector<24x64xf32>
    %3 = tpu.matmul %1, %2, %cst {dimension_numbers = #tpu.dot_dimension_numbers<[1], [0], [0], [1], [0, 0, 1, 1], [], []>} : vector<24x24xbf16>, vector<24x64xbf16>, vector<24x64xf32> -> vector<24x64xf32>
    %c0_3 = arith.constant 0 : index
    %c0_4 = arith.constant 0 : index
    %4 = vector.load %arg7[%c0_3, %c0_4] : memref<1x64xf32, #tpu.memory_space<vmem>>, vector<1x64xf32>
    %5 = vector.broadcast %4 : vector<1x64xf32> to vector<24x64xf32>
    %6 = arith.addf %3, %5 : vector<24x64xf32>
    %cst_5 = arith.constant 0.000000e+00 : f32
    %7 = vector.broadcast %cst_5 : f32 to vector<24x64xf32>
    %8 = arith.cmpf ogt, %6, %7 : vector<24x64xf32>
    %cst_6 = arith.constant 2.000000e-01 : f32
    %9 = vector.broadcast %cst_6 : f32 to vector<24x64xf32>
    %10 = arith.mulf %9, %6 : vector<24x64xf32>
    %11 = arith.select %8, %6, %10 : vector<24x64xi1>, vector<24x64xf32>
    %12 = arith.truncf %11 : vector<24x64xf32> to vector<24x64xbf16>
    %c0_7 = arith.constant 0 : index
    %c0_8 = arith.constant 0 : index
    %13 = vector.load %arg3[%c0_7, %c0_8] : memref<64x64xbf16, #tpu.memory_space<vmem>>, vector<64x64xbf16>
    %cst_9 = arith.constant dense<0.000000e+00> : vector<24x64xf32>
    %14 = tpu.matmul %12, %13, %cst_9 {dimension_numbers = #tpu.dot_dimension_numbers<[1], [0], [0], [1], [0, 0, 1, 1], [], []>} : vector<24x64xbf16>, vector<64x64xbf16>, vector<24x64xf32> -> vector<24x64xf32>
    %c0_10 = arith.constant 0 : index
    %c0_11 = arith.constant 0 : index
    %15 = vector.load %arg8[%c0_10, %c0_11] : memref<1x64xf32, #tpu.memory_space<vmem>>, vector<1x64xf32>
    %16 = vector.broadcast %15 : vector<1x64xf32> to vector<24x64xf32>
    %17 = arith.addf %14, %16 : vector<24x64xf32>
    %cst_12 = arith.constant 0.000000e+00 : f32
    %18 = vector.broadcast %cst_12 : f32 to vector<24x64xf32>
    %19 = arith.cmpf ogt, %17, %18 : vector<24x64xf32>
    %cst_13 = arith.constant 2.000000e-01 : f32
    %20 = vector.broadcast %cst_13 : f32 to vector<24x64xf32>
    %21 = arith.mulf %20, %17 : vector<24x64xf32>
    %22 = arith.select %19, %17, %21 : vector<24x64xi1>, vector<24x64xf32>
    %23 = arith.truncf %22 : vector<24x64xf32> to vector<24x64xbf16>
    %c0_14 = arith.constant 0 : index
    %c0_15 = arith.constant 0 : index
    %24 = vector.load %arg4[%c0_14, %c0_15] : memref<64x64xbf16, #tpu.memory_space<vmem>>, vector<64x64xbf16>
    %cst_16 = arith.constant dense<0.000000e+00> : vector<24x64xf32>
    %25 = tpu.matmul %23, %24, %cst_16 {dimension_numbers = #tpu.dot_dimension_numbers<[1], [0], [0], [1], [0, 0, 1, 1], [], []>} : vector<24x64xbf16>, vector<64x64xbf16>, vector<24x64xf32> -> vector<24x64xf32>
    %c0_17 = arith.constant 0 : index
    %c0_18 = arith.constant 0 : index
    %26 = vector.load %arg9[%c0_17, %c0_18] : memref<1x64xf32, #tpu.memory_space<vmem>>, vector<1x64xf32>
    %27 = vector.broadcast %26 : vector<1x64xf32> to vector<24x64xf32>
    %28 = arith.addf %25, %27 : vector<24x64xf32>
    %cst_19 = arith.constant 0.000000e+00 : f32
    %29 = vector.broadcast %cst_19 : f32 to vector<24x64xf32>
    %30 = arith.cmpf ogt, %28, %29 : vector<24x64xf32>
    %cst_20 = arith.constant 2.000000e-01 : f32
    %31 = vector.broadcast %cst_20 : f32 to vector<24x64xf32>
    %32 = arith.mulf %31, %28 : vector<24x64xf32>
    %33 = arith.select %30, %28, %32 : vector<24x64xi1>, vector<24x64xf32>
    %34 = arith.truncf %33 : vector<24x64xf32> to vector<24x64xbf16>
    %c0_21 = arith.constant 0 : index
    %c0_22 = arith.constant 0 : index
    %35 = vector.load %arg5[%c0_21, %c0_22] : memref<64x64xbf16, #tpu.memory_space<vmem>>, vector<64x64xbf16>
    %cst_23 = arith.constant dense<0.000000e+00> : vector<24x64xf32>
    %36 = tpu.matmul %34, %35, %cst_23 {dimension_numbers = #tpu.dot_dimension_numbers<[1], [0], [0], [1], [0, 0, 1, 1], [], []>} : vector<24x64xbf16>, vector<64x64xbf16>, vector<24x64xf32> -> vector<24x64xf32>
    %c0_24 = arith.constant 0 : index
    %c0_25 = arith.constant 0 : index
    %37 = vector.load %arg10[%c0_24, %c0_25] : memref<1x64xf32, #tpu.memory_space<vmem>>, vector<1x64xf32>
    %38 = vector.broadcast %37 : vector<1x64xf32> to vector<24x64xf32>
    %39 = arith.addf %36, %38 : vector<24x64xf32>
    %cst_26 = arith.constant 0.000000e+00 : f32
    %40 = vector.broadcast %cst_26 : f32 to vector<24x64xf32>
    %41 = arith.cmpf ogt, %39, %40 : vector<24x64xf32>
    %cst_27 = arith.constant 2.000000e-01 : f32
    %42 = vector.broadcast %cst_27 : f32 to vector<24x64xf32>
    %43 = arith.mulf %42, %39 : vector<24x64xf32>
    %44 = arith.select %41, %39, %43 : vector<24x64xi1>, vector<24x64xf32>
    %45 = arith.truncf %44 : vector<24x64xf32> to vector<24x64xbf16>
    %c0_28 = arith.constant 0 : index
    %c0_29 = arith.constant 0 : index
    %46 = vector.load %arg6[%c0_28, %c0_29] : memref<64x128xbf16, #tpu.memory_space<vmem>>, vector<64x128xbf16>
    %cst_30 = arith.constant dense<0.000000e+00> : vector<24x128xf32>
    %47 = tpu.matmul %45, %46, %cst_30 {dimension_numbers = #tpu.dot_dimension_numbers<[1], [0], [0], [1], [0, 0, 1, 1], [], []>} : vector<24x64xbf16>, vector<64x128xbf16>, vector<24x128xf32> -> vector<24x128xf32>
    %c0_31 = arith.constant 0 : index
    %c0_32 = arith.constant 0 : index
    %48 = vector.load %arg11[%c0_31, %c0_32] : memref<1x128xf32, #tpu.memory_space<vmem>>, vector<1x128xf32>
    %49 = vector.broadcast %48 : vector<1x128xf32> to vector<24x128xf32>
    %50 = arith.addf %47, %49 : vector<24x128xf32>
    %51 = arith.truncf %50 : vector<24x128xf32> to vector<24x128xbf16>
    %c0_33 = arith.constant 0 : index
    %c0_34 = arith.constant 0 : index
    %52 = vector.load %arg12[%c0_33, %c0_34] : memref<24x128xbf16, #tpu.memory_space<vmem>>, vector<24x128xbf16>
    tpu.vector_store %arg12[%c0_33, %c0_34], %51 {strides = array<i32>} : memref<24x128xbf16, #tpu.memory_space<vmem>>, vector<24x128xbf16>,
    return
  }
  func.func @transform_0(%arg0: i32) -> (i32, i32) {
    %c0_i32 = arith.constant 0 : i32
    %c0_i32_0 = arith.constant 0 : i32
    return %arg0, %c0_i32 : i32, i32
  }
  func.func @transform_1(%arg0: i32) -> (i32, i32) {
    %c0_i32 = arith.constant 0 : i32
    %c0_i32_0 = arith.constant 0 : i32
    %c0_i32_1 = arith.constant 0 : i32
    return %c0_i32, %c0_i32_0 : i32, i32
  }
  func.func @transform_2(%arg0: i32) -> (i32, i32) {
    %c0_i32 = arith.constant 0 : i32
    %c0_i32_0 = arith.constant 0 : i32
    %c0_i32_1 = arith.constant 0 : i32
    return %c0_i32, %c0_i32_0 : i32, i32
  }
  func.func @transform_3(%arg0: i32) -> (i32, i32) {
    %c0_i32 = arith.constant 0 : i32
    %c0_i32_0 = arith.constant 0 : i32
    %c0_i32_1 = arith.constant 0 : i32
    return %c0_i32, %c0_i32_0 : i32, i32
  }
  func.func @transform_4(%arg0: i32) -> (i32, i32) {
    %c0_i32 = arith.constant 0 : i32
    %c0_i32_0 = arith.constant 0 : i32
    %c0_i32_1 = arith.constant 0 : i32
    return %c0_i32, %c0_i32_0 : i32, i32
  }
  func.func @transform_5(%arg0: i32) -> (i32, i32) {
    %c0_i32 = arith.constant 0 : i32
    %c0_i32_0 = arith.constant 0 : i32
    %c0_i32_1 = arith.constant 0 : i32
    return %c0_i32, %c0_i32_0 : i32, i32
  }
  func.func @transform_6(%arg0: i32) -> (i32, i32) {
    %c0_i32 = arith.constant 0 : i32
    %c0_i32_0 = arith.constant 0 : i32
    %c0_i32_1 = arith.constant 0 : i32
    return %c0_i32, %c0_i32_0 : i32, i32
  }
  func.func @transform_7(%arg0: i32) -> (i32, i32) {
    %c0_i32 = arith.constant 0 : i32
    %c0_i32_0 = arith.constant 0 : i32
    %c0_i32_1 = arith.constant 0 : i32
    return %c0_i32, %c0_i32_0 : i32, i32
  }
  func.func @transform_8(%arg0: i32) -> (i32, i32) {
    %c0_i32 = arith.constant 0 : i32
    %c0_i32_0 = arith.constant 0 : i32
    %c0_i32_1 = arith.constant 0 : i32
    return %c0_i32, %c0_i32_0 : i32, i32
  }
  func.func @transform_9(%arg0: i32) -> (i32, i32) {
    %c0_i32 = arith.constant 0 : i32
    %c0_i32_0 = arith.constant 0 : i32
    %c0_i32_1 = arith.constant 0 : i32
    return %c0_i32, %c0_i32_0 : i32, i32
  }
  func.func @transform_10(%arg0: i32) -> (i32, i32) {
    %c0_i32 = arith.constant 0 : i32
    %c0_i32_0 = arith.constant 0 : i32
    %c0_i32_1 = arith.constant 0 : i32
    return %c0_i32, %c0_i32_0 : i32, i32
  }
  func.func @transform_11(%arg0: i32) -> (i32, i32) {
    %c0_i32 = arith.constant 0 : i32
    %c0_i32_0 = arith.constant 0 : i32
    return %arg0, %c0_i32 : i32, i32
  }
}

</mosaic_0001>

<bundles_post_ra>
// kernel: tpu_custom_call.1
= control target key start
LH: loop header
LB: loop body
LE: loop exit
PB: predicated region body
PF: predicated region fallthrough
CT: control target
= control target key end

     0   :  { %16 = vsyncpa [#allocation3], 0  ;;  %s1176_s0 = inlined_call_operand.hbm [shape: f32[24,24], index: 0, kind: input, shape index: {}]   ;;  %s1177_s1 = inlined_call_operand.hbm [shape: bf16[24,64], index: 1, kind: input, shape index: {}]   ;;  %s1178_s2 = inlined_call_operand.hbm [shape: bf16[64,64], index: 2, kind: input, shape index: {}]   ;;  %s1179_s3 = inlined_call_operand.hbm [shape: bf16[64,64], index: 3, kind: input, shape index: {}]   ;;  %s1180_s4 = inlined_call_operand.hbm [shape: bf16[64,64], index: 4, kind: input, shape index: {}]   ;;  %s1181_s5 = inlined_call_operand.hbm [shape: bf16[64,128], index: 5, kind: input, shape index: {}]   ;;  %s1182_s6 = inlined_call_operand.vmem [shape: f32[1,64], index: 6, kind: input, shape index: {}]   ;;  %s1183_s7 = inlined_call_operand.vmem [shape: f32[1,64], index: 7, kind: input, shape index: {}]   ;;  %s1184_s8 = inlined_call_operand.vmem [shape: f32[1,64], index: 8, kind: input, shape index: {}]   ;;  %s1185_s9 = inlined_call_operand.vmem [shape: f32[1,64], index: 9, kind: input, shape index: {}]   ;;  %s1186_s10 = inlined_call_operand.vmem [shape: f32[1,128], index: 10, kind: input, shape index: {}]   ;;  %s1187_s11 = inlined_call_operand.hbm [shape: bf16[24,128], index: 11, kind: output, shape index: {}]  }
   0x1   :  { %17 = vsyncpa [#allocation6], 0 }
   0x2   :  { %18 = vsyncpa [#allocation9], 0 }
   0x3   :  { %19 = vsyncpa [#allocation12], 0 }
   0x4   :  { %20 = vsyncpa [#allocation4], 0  ;;  %s980_s17 = smov [#allocation5]   ;;  %s816_s21 = scalar_lea.hbm %s1177_s1, 192 }
   0x5   :  { %s38_s18 = sshll.u32 %s980_s17, 4  ;;  %p817_p0 = scmp.ne.s32.totalorder %s1177_s1, %s816_s21  ;;  %s39_s18 = int_to_ptr.vmem [resolvable:$true] %s38_s18 }
   0x6   :  { %p820_p1 = scmp.lt.u32.totalorder %s816_s21, %s1177_s1 }
   0x8   :  { %p822_p2 = pnand %p820_p1, %p817_p0 }
   0xa   :  { %825 = shalt.err (!%p822_p2)
}
   0xb   :  { %s826_s26 = scalar_lea.vmem %s39_s18, 192  ;;  %p831_p4 = scmp.lt.s32.totalorder %s39_s18, %s39_s18 }
   0xc   :  { %p827_p3 = scmp.ne.s32.totalorder %s39_s18, %s826_s26  ;;  %p832_p5 = scmp.lt.s32.totalorder %s826_s26, %s826_s26 }
   0xe   :  { %p833_p6 = por %p832_p5, %p831_p4 }
  0x10   :  { %p834_p7 = pnand %p833_p6, %p827_p3 }
  0x12   :  { %837 = shalt.err (!%p834_p7)
}
  0x13   :  { %s981_s27 = smov 64   ;;  %s982_s28 = smov 4  }
  0x14   :  { %44 = dma.hbm_to_vmem [thread:$0]  %s1177_s1, 192, %s39_s18, [#allocation6], %s981_s27, %s981_s27, %s982_s28  }
  0x15   :  { %s983_s12 = smov [#allocation8]   ;;  %s984_s14 = smov [#allocation2]  }
  0x16   :  { %s62_s13 = sshll.u32 %s983_s12, 4  ;;  %s26_s15 = sshll.u32 %s984_s14, 4  ;;  %s63_s13 = int_to_ptr.vmem [resolvable:$true] %s62_s13  ;;  %s27_s15 = int_to_ptr.vmem [resolvable:$true] %s26_s15 }
  0x17   :  { %s838_s19 = scalar_lea.hbm %s1179_s3, 512 }
  0x18   :  { %p839_p8 = scmp.ne.s32.totalorder %s1179_s3, %s838_s19  ;;  %p842_p9 = scmp.lt.u32.totalorder %s838_s19, %s1179_s3 }
  0x1a   :  { %p844_p10 = pnand %p842_p9, %p839_p8 }
  0x1c   :  { %847 = shalt.err (!%p844_p10)
}
  0x1d   :  { %s848_s1 = scalar_lea.vmem %s63_s13, 512  ;;  %p853_p12 = scmp.lt.s32.totalorder %s63_s13, %s63_s13 }
  0x1e   :  { %p849_p11 = scmp.ne.s32.totalorder %s63_s13, %s848_s1  ;;  %p854_p13 = scmp.lt.s32.totalorder %s848_s1, %s848_s1 }
  0x20   :  { %p855_p0 = por %p854_p13, %p853_p12 }
  0x22   :  { %p856_p1 = pnand %p855_p0, %p849_p11 }
  0x24   :  { %859 = shalt.err (!%p856_p1)
}
  0x25   :  { %68 = dma.hbm_to_vmem [thread:$0]  %s1179_s3, 512, %s63_s13, [#allocation9], %s981_s27, %s981_s27, %s982_s28  }
  0x26   :  { %s860_s29 = scalar_lea.hbm %s1176_s0, 384 }
  0x27   :  { %p861_p2 = scmp.ne.s32.totalorder %s1176_s0, %s860_s29  ;;  %p864_p3 = scmp.lt.u32.totalorder %s860_s29, %s1176_s0 }
  0x29   :  { %p866_p4 = pnand %p864_p3, %p861_p2 }
  0x2b   :  { %869 = shalt.err (!%p866_p4)
}
  0x2c   :  { %s870_s17 = scalar_lea.vmem %s27_s15, 384  ;;  %p875_p6 = scmp.lt.s32.totalorder %s27_s15, %s27_s15 }
  0x2d   :  { %p871_p5 = scmp.ne.s32.totalorder %s27_s15, %s870_s17  ;;  %p876_p7 = scmp.lt.s32.totalorder %s870_s17, %s870_s17 }
  0x2f   :  { %p877_p8 = por %p876_p7, %p875_p6 }
  0x31   :  { %p878_p9 = pnand %p877_p8, %p871_p5 }
  0x33   :  { %881 = shalt.err (!%p878_p9)
}
  0x34   :  { %s985_s3 = smov 128   ;;  %s986_s13 = smov 8  }
  0x35   :  { %32 = dma.hbm_to_vmem [thread:$0]  %s1176_s0, 384, %s27_s15, [#allocation3], %s985_s3, %s985_s3, %s986_s13  }
  0x36   :  { %s987_s21 = smov [#allocation7]   ;;  %s988_s23 = smov [#allocation10]  }
  0x37   :  { %s50_s22 = sshll.u32 %s987_s21, 4  ;;  %s74_s1 = sshll.u32 %s988_s23, 4  ;;  %s51_s22 = int_to_ptr.vmem [resolvable:$true] %s50_s22  ;;  %s75_s1 = int_to_ptr.vmem [resolvable:$true] %s74_s1 }
  0x38   :  { %s882_s25 = scalar_lea.hbm %s1178_s2, 512 }
  0x39   :  { %p883_p10 = scmp.ne.s32.totalorder %s1178_s2, %s882_s25  ;;  %p886_p11 = scmp.lt.u32.totalorder %s882_s25, %s1178_s2 }
  0x3b   :  { %p888_p12 = pnand %p886_p11, %p883_p10 }
  0x3d   :  { %891 = shalt.err (!%p888_p12)
}
  0x3e   :  { %s892_s0 = scalar_lea.vmem %s51_s22, 512  ;;  %p897_p0 = scmp.lt.s32.totalorder %s51_s22, %s51_s22 }
  0x3f   :  { %p893_p13 = scmp.ne.s32.totalorder %s51_s22, %s892_s0  ;;  %p898_p1 = scmp.lt.s32.totalorder %s892_s0, %s892_s0 }
  0x41   :  { %p899_p2 = por %p898_p1, %p897_p0 }
  0x43   :  { %p900_p3 = pnand %p899_p2, %p893_p13 }
  0x45   :  { %903 = shalt.err (!%p900_p3)
}
  0x46   :  { %56 = dma.hbm_to_vmem [thread:$0]  %s1178_s2, 512, %s51_s22, [#allocation6], %s981_s27, %s981_s27, %s982_s28  }
  0x47   :  { %s904_s3 = scalar_lea.hbm %s1180_s4, 512 }
  0x48   :  { %p905_p4 = scmp.ne.s32.totalorder %s1180_s4, %s904_s3  ;;  %p908_p5 = scmp.lt.u32.totalorder %s904_s3, %s1180_s4 }
  0x4a   :  { %p910_p6 = pnand %p908_p5, %p905_p4 }
  0x4c   :  { %913 = shalt.err (!%p910_p6)
}
  0x4d   :  { %s914_s23 = scalar_lea.vmem %s75_s1, 512  ;;  %p919_p8 = scmp.lt.s32.totalorder %s75_s1, %s75_s1 }
  0x4e   :  { %p915_p7 = scmp.ne.s32.totalorder %s75_s1, %s914_s23  ;;  %p920_p9 = scmp.lt.s32.totalorder %s914_s23, %s914_s23 }
  0x50   :  { %p921_p10 = por %p920_p9, %p919_p8 }
  0x52   :  { %p922_p11 = pnand %p921_p10, %p915_p7 }
  0x54   :  { %925 = shalt.err (!%p922_p11)
}
  0x55   :  { %80 = dma.hbm_to_vmem [thread:$0]  %s1180_s4, 512, %s75_s1, [#allocation9], %s981_s27, %s981_s27, %s982_s28  }
  0x56   :  { %s989_s18 = smov [#allocation11]   ;;  %s926_s29 = scalar_lea.hbm %s1181_s5, 512 }
  0x57   :  { %s86_s24 = sshll.u32 %s989_s18, 4  ;;  %p927_p12 = scmp.ne.s32.totalorder %s1181_s5, %s926_s29  ;;  %s87_s24 = int_to_ptr.vmem [resolvable:$true] %s86_s24 }
  0x58   :  { %p930_p13 = scmp.lt.u32.totalorder %s926_s29, %s1181_s5 }
  0x5a   :  { %p932_p0 = pnand %p930_p13, %p927_p12 }
  0x5c   :  { %935 = shalt.err (!%p932_p0)
}
  0x5d   :  { %s936_s14 = scalar_lea.vmem %s87_s24, 512  ;;  %p941_p2 = scmp.lt.s32.totalorder %s87_s24, %s87_s24 }
  0x5e   :  { %p937_p1 = scmp.ne.s32.totalorder %s87_s24, %s936_s14  ;;  %p942_p3 = scmp.lt.s32.totalorder %s936_s14, %s936_s14 }
  0x60   :  { %p943_p4 = por %p942_p3, %p941_p2 }
  0x62   :  { %p944_p5 = pnand %p943_p4, %p937_p1 }
  0x64   :  { %947 = shalt.err (!%p944_p5)
}
  0x65   :  { %92 = dma.hbm_to_vmem [thread:$0]  %s1181_s5, 512, %s87_s24, [#allocation12], %s981_s27, %s981_s27, %s982_s28  }
  0x66   :  { %970 = dma.done.wait [#allocation3], 384  }
  0x67   :  { %971 = vsyncadd [#allocation3], 4294966912 }
  0x68   :  { %972 = dma.done.wait [#allocation6], 704  }
  0x69   :  { %973 = vsyncadd [#allocation6], 4294966592 }
  0x6a   :  { %974 = dma.done.wait [#allocation9], 1024  }
  0x6b   :  { %975 = vsyncadd [#allocation9], 4294966272 }
  0x6c   :  { %976 = dma.done.wait [#allocation12], 512  }
  0x6d   :  { %977 = vsyncadd [#allocation12], 4294966784  ;;  %v798_v0 = vld [vmem:[#allocation5] sm:$0xff]   ;;  %vm153_vm0 = vcmask 1043456   ;;  %v799_v1 = vld [vmem:[#allocation5 + $0x8] ss:$0 sps:$4 sm:$0xff]  }
  0x6e   :  { %v122_v2 = vld [vmem:[#allocation2] sm:$0xff]  ;;  %730 = vmatprep.subr.bf16.mxu0 %v798_v0  ;;  %v123_v3 = vld [vmem:[#allocation2 + $0x8] sm:$0xff]  ;;  %vm146_vm1 = vcmask 195584   ;;  %v124_v4 = vld [vmem:[#allocation2 + $0x10] sm:$0xff]  ;;  %v155_v5 = vsel %vm153_vm0, %v799_v1, 0  ;;  %vm255_vm5 = vcmask 523264  }
  0x6f   :  { %731 = vmatpush3.bf16.msra.mxu0 %v798_v0  ;;  %v125_v6 = vpack.c.bf16 %v123_v3, %v122_v2  ;;  %v800_v7 = vld [vmem:[#allocation7] sm:$0xff]   ;;  %v126_v8 = vpack.c.bf16 %v124_v4, %v124_v4  ;;  %v801_v9 = vld [vmem:[#allocation7 + $0x8] sm:$0xff]   ;;  %v802_v10 = vld [vmem:[#allocation7 + $0x10] sm:$0xff]   ;;  %s990_s20 = smov [#allocation13]  }
  0x70   :  { %786 = vmatprep.subr.msk.bf16.mxu0 %vm153_vm0, %v799_v1  ;;  %738 = vmatprep.subr.bf16.mxu1 %v800_v7  ;;  %v803_v11 = vld [vmem:[#allocation7 + $0x18] sm:$0xff]   ;;  %v804_v12 = vld [vmem:[#allocation8] sm:$0xff]   ;;  %v805_v29 = vld [vmem:[#allocation8 + $0x8] sm:$0xff]   ;;  %s643_s21 = sshll.u32 %s990_s20, 4  ;;  %s644_s21 = int_to_ptr.vmem [resolvable:$true] %s643_s21 }
  0x71   :  { %734 = vmatprep.mubr.msk.bf16.mxu0 %vm146_vm1, %v125_v6  ;;  %739 = vmatpush3.bf16.msra.mxu1 %v800_v7  ;;  %v658_v13 = vld [vmem:[%s1182_s6] ss:$0 sm:$0xff]  ;;  %v806_v30 = vld [vmem:[#allocation8 + $0x10] sm:$0xff]   ;;  %v808_v32 = vld [vmem:[#allocation10] sm:$0xff]   ;;  %s948_s23 = scalar_lea.vmem %s644_s21, 192  ;;  %p953_p7 = scmp.lt.s32.totalorder %s644_s21, %s644_s21 }
  0x72   :  { %740 = vmatprep.subr.bf16.mxu1 %v801_v9  ;;  %v807_v31 = vld [vmem:[#allocation8 + $0x18] sm:$0xff]   ;;  %v809_v49 = vld [vmem:[#allocation10 + $0x8] sm:$0xff]   ;;  %v810_v50 = vld [vmem:[#allocation10 + $0x10] sm:$0xff]   ;;  %p949_p6 = scmp.ne.s32.totalorder %s644_s21, %s948_s23  ;;  %p954_p8 = scmp.lt.s32.totalorder %s948_s23, %s948_s23 }
  0x73   :  { %733 = vmatpush3.bf16.msra.mxu0 %v155_v5  ;;  %v663_v33 = vld [vmem:[%s1183_s7] ss:$0 sm:$0xff]  ;;  %v812_v52 = vld [vmem:[#allocation11] sm:$0xff]   ;;  %v813_v5 = vld [vmem:[#allocation11 + $0x8] sm:$0xff]  }
  0x74   :  { %750 = vmatprep.subr.bf16.mxu0 %v804_v12  ;;  %v811_v51 = vld [vmem:[#allocation10 + $0x18] sm:$0xff]   ;;  %v814_v6 = vld [vmem:[#allocation11 + $0x10] sm:$0xff]   ;;  %p955_p9 = por %p954_p8, %p953_p7 }
  0x75   :  { %741 = vmatpush3.bf16.msra.mxu1 %v801_v9  ;;  %v670_v53 = vld [vmem:[%s1184_s8] ss:$0 sm:$0xff] }
  0x76   :  { %735 = vmatmul.mubr.msk.bf16.vlgmr.msra.gmra.mrb[0].mxu0 %vm146_vm1, %v126_v8  ;;  %742 = vmatprep.subr.bf16.mxu1 %v802_v10  ;;  %v815_v7 = vld [vmem:[#allocation11 + $0x18] sm:$0xff]   ;;  %p956_p10 = pnand %p955_p9, %p949_p6 }
  0x77   :  { %751 = vmatpush3.bf16.msra.mxu0 %v804_v12  ;;  %v677_v8 = vld [vmem:[%s1185_s9] ss:$0 sm:$0xff] }
  0x78   :  { %752 = vmatprep.subr.bf16.mxu0 %v805_v29 }
  0x79   :  { %743 = vmatpush3.bf16.msra.mxu1 %v802_v10 }
  0x7a   :  { %744 = vmatprep.subr.bf16.mxu1 %v803_v11 }
  0x7b   :  { %753 = vmatpush3.bf16.msra.mxu0 %v805_v29 }
  0x7c   :  { %754 = vmatprep.subr.bf16.mxu0 %v806_v30 }
  0x7d   :  { %745 = vmatpush3.bf16.msra.mxu1 %v803_v11 }
  0x7e   :  { %762 = vmatprep.subr.bf16.mxu1 %v808_v32 }
  0x7f   :  { %755 = vmatpush3.bf16.msra.mxu0 %v806_v30 }
  0x80   :  { %756 = vmatprep.subr.bf16.mxu0 %v807_v31 }
  0x83   :  { %757 = vmatpush3.bf16.msra.mxu0 %v807_v31 }
  0x84   :  { %774 = vmatprep.subr.bf16.mxu0 %v812_v52 }
 0x149   :  { %v736_v14 = vpop.f32.mrb[0].mxu0 }
 0x14a   :  { %v200_v15 = vadd.f32 %v736_v14, %v658_v13  ;;  %v191_v16 = vpop.f32.mrb[1].mxu0 }
 0x14b   :  { %v192_v17 = vadd.f32 %v658_v13, %v191_v16  ;;  %v737_v18 = vpop.f32.mrb[2].mxu0 }
 0x14c   :  { %v210_v19 = vmul.f32 0.2, %v200_v15  ;;  %v194_v20 = vpop.f32.mrb[3].mxu0  ;;  %vm207_vm2 = vcmp.gt.f32.partialorder %v200_v15, 0.0 }
 0x14d   :  { %v208_v21 = vmul.f32 0.2, %v192_v17  ;;  %v195_v22 = vadd.f32 %v658_v13, %v194_v20  ;;  %vm205_vm3 = vcmp.gt.f32.partialorder %v192_v17, 0.0 }
 0x14e   :  { %v213_v24 = vsel %vm207_vm2, %v200_v15, %v210_v19 }
 0x14f   :  { %v209_v23 = vmul.f32 0.2, %v195_v22  ;;  %vm206_vm4 = vcmp.gt.f32.partialorder %v195_v22, 0.0  ;;  %v211_v25 = vsel %vm205_vm3, %v192_v17, %v208_v21  ;;  %v215_v28 = vpack.c.bf16 %v213_v24, %v213_v24  ;;  %v684_v24 = vld [vmem:[%s1186_s10] ss:$0 sm:$0xff] }
 0x151   :  { %v212_v26 = vsel %vm206_vm4, %v195_v22, %v209_v23 }
 0x152   :  { %v214_v27 = vpack.c.bf16 %v212_v26, %v211_v25 }
 0x154   :  { %746 = vmatprep.mubr.msk.bf16.mxu1 %vm255_vm5, %v214_v27 }
 0x155   :  { %747 = vmatmul.mubr.msk.bf16.vlgmr.msra.gmra.mrb[0].mxu1 %vm255_vm5, %v215_v28 }
 0x156   :  { %763 = vmatpush3.bf16.msra.mxu1 %v808_v32 }
 0x157   :  { %764 = vmatprep.subr.bf16.mxu1 %v809_v49 }
 0x15a   :  { %765 = vmatpush3.bf16.msra.mxu1 %v809_v49 }
 0x15b   :  { %766 = vmatprep.subr.bf16.mxu1 %v810_v50 }
 0x15e   :  { %767 = vmatpush3.bf16.msra.mxu1 %v810_v50 }
 0x15f   :  { %768 = vmatprep.subr.bf16.mxu1 %v811_v51 }
 0x162   :  { %769 = vmatpush3.bf16.msra.mxu1 %v811_v51 }
 0x228   :  { %v748_v34 = vpop.f32.mrb[0].mxu1 }
 0x229   :  { %v305_v35 = vadd.f32 %v748_v34, %v663_v33  ;;  %v296_v36 = vpop.f32.mrb[1].mxu1 }
 0x22a   :  { %v297_v37 = vadd.f32 %v663_v33, %v296_v36  ;;  %v749_v38 = vpop.f32.mrb[2].mxu1 }
 0x22b   :  { %v315_v39 = vmul.f32 0.2, %v305_v35  ;;  %v299_v40 = vpop.f32.mrb[3].mxu1  ;;  %vm312_vm6 = vcmp.gt.f32.partialorder %v305_v35, 0.0 }
 0x22c   :  { %v313_v41 = vmul.f32 0.2, %v297_v37  ;;  %v300_v42 = vadd.f32 %v663_v33, %v299_v40  ;;  %vm310_vm7 = vcmp.gt.f32.partialorder %v297_v37, 0.0 }
 0x22d   :  { %v318_v44 = vsel %vm312_vm6, %v305_v35, %v315_v39 }
 0x22e   :  { %vm311_vm8 = vcmp.gt.f32.partialorder %v300_v42, 0.0  ;;  %v314_v43 = vmul.f32 0.2, %v300_v42  ;;  %v316_v45 = vsel %vm310_vm7, %v297_v37, %v313_v41  ;;  %v320_v48 = vpack.c.bf16 %v318_v44, %v318_v44 }
 0x230   :  { %v317_v46 = vsel %vm311_vm8, %v300_v42, %v314_v43 }
 0x231   :  { %v319_v47 = vpack.c.bf16 %v317_v46, %v316_v45 }
 0x233   :  { %758 = vmatprep.mubr.msk.bf16.mxu0 %vm255_vm5, %v319_v47 }
 0x234   :  { %759 = vmatmul.mubr.msk.bf16.vlgmr.msra.gmra.mrb[4].mxu0 %vm255_vm5, %v320_v48 }
 0x235   :  { %775 = vmatpush3.bf16.msra.mxu0 %v812_v52 }
 0x236   :  { %776 = vmatprep.subr.bf16.mxu0 %v813_v5 }
 0x239   :  { %777 = vmatpush3.bf16.msra.mxu0 %v813_v5 }
 0x23a   :  { %778 = vmatprep.subr.bf16.mxu0 %v814_v6 }
 0x23d   :  { %779 = vmatpush3.bf16.msra.mxu0 %v814_v6 }
 0x23e   :  { %780 = vmatprep.subr.bf16.mxu0 %v815_v7 }
 0x241   :  { %781 = vmatpush3.bf16.msra.mxu0 %v815_v7 }
 0x307   :  { %v760_v54 = vpop.f32.mrb[4].mxu0 }
 0x308   :  { %v409_v55 = vadd.f32 %v760_v54, %v670_v53  ;;  %v400_v56 = vpop.f32.mrb[5].mxu0 }
 0x309   :  { %v401_v57 = vadd.f32 %v670_v53, %v400_v56  ;;  %v761_v58 = vpop.f32.mrb[6].mxu0 }
 0x30a   :  { %v419_v59 = vmul.f32 0.2, %v409_v55  ;;  %v403_v60 = vpop.f32.mrb[7].mxu0  ;;  %vm416_vm9 = vcmp.gt.f32.partialorder %v409_v55, 0.0 }
 0x30b   :  { %v417_v61 = vmul.f32 0.2, %v401_v57  ;;  %v404_v62 = vadd.f32 %v670_v53, %v403_v60  ;;  %vm414_vm10 = vcmp.gt.f32.partialorder %v401_v57, 0.0 }
 0x30c   :  { %v422_v0 = vsel %vm416_vm9, %v409_v55, %v419_v59 }
 0x30d   :  { %vm415_vm11 = vcmp.gt.f32.partialorder %v404_v62, 0.0  ;;  %v418_v63 = vmul.f32 0.2, %v404_v62  ;;  %v420_v1 = vsel %vm414_vm10, %v401_v57, %v417_v61  ;;  %v424_v4 = vpack.c.bf16 %v422_v0, %v422_v0 }
 0x30f   :  { %v421_v2 = vsel %vm415_vm11, %v404_v62, %v418_v63 }
 0x310   :  { %v423_v3 = vpack.c.bf16 %v421_v2, %v420_v1 }
 0x312   :  { %770 = vmatprep.mubr.msk.bf16.mxu1 %vm255_vm5, %v423_v3 }
 0x313   :  { %771 = vmatmul.mubr.msk.bf16.vlgmr.msra.gmra.mrb[4].mxu1 %vm255_vm5, %v424_v4 }
 0x3e6   :  { %v772_v9 = vpop.f32.mrb[4].mxu1 }
 0x3e7   :  { %v513_v10 = vadd.f32 %v772_v9, %v677_v8  ;;  %v504_v11 = vpop.f32.mrb[5].mxu1 }
 0x3e8   :  { %v505_v12 = vadd.f32 %v677_v8, %v504_v11  ;;  %v773_v13 = vpop.f32.mrb[6].mxu1 }
 0x3e9   :  { %v523_v14 = vmul.f32 0.2, %v513_v10  ;;  %v507_v15 = vpop.f32.mrb[7].mxu1  ;;  %vm520_vm12 = vcmp.gt.f32.partialorder %v513_v10, 0.0 }
 0x3ea   :  { %v521_v16 = vmul.f32 0.2, %v505_v12  ;;  %v508_v17 = vadd.f32 %v677_v8, %v507_v15  ;;  %vm518_vm13 = vcmp.gt.f32.partialorder %v505_v12, 0.0 }
 0x3eb   :  { %v526_v19 = vsel %vm520_vm12, %v513_v10, %v523_v14 }
 0x3ec   :  { %vm519_vm14 = vcmp.gt.f32.partialorder %v508_v17, 0.0  ;;  %v522_v18 = vmul.f32 0.2, %v508_v17  ;;  %v524_v20 = vsel %vm518_vm13, %v505_v12, %v521_v16  ;;  %v528_v23 = vpack.c.bf16 %v526_v19, %v526_v19 }
 0x3ee   :  { %v525_v21 = vsel %vm519_vm14, %v508_v17, %v522_v18 }
 0x3ef   :  { %v527_v22 = vpack.c.bf16 %v525_v21, %v524_v20 }
 0x3f1   :  { %782 = vmatprep.mubr.msk.bf16.mxu0 %vm255_vm5, %v527_v22 }
 0x3f2   :  { %783 = vmatmul.mubr.msk.bf16.vlgmr.msra.gmra.mrb[8].mxu0 %vm255_vm5, %v528_v23 }
 0x4c5   :  { %v784_v25 = vpop.f32.mrb[8].mxu0 }
 0x4c6   :  { %v617_v26 = vadd.f32 %v784_v25, %v684_v24  ;;  %v608_v27 = vpop.f32.mrb[9].mxu0 }
 0x4c7   :  { %v785_v28 = vpop.f32.mrb[10].mxu0  ;;  %v609_v31 = vadd.f32 %v684_v24, %v608_v27 }
 0x4c8   :  { %v696_v29 = vpack.c.bf16 %v617_v26, %v617_v26  ;;  %v611_v30 = vpop.f32.mrb[11].mxu0 }
 0x4c9   :  { %v612_v32 = vadd.f32 %v684_v24, %v611_v30 }
 0x4ca   :  { %637 = vst [vmem:[#allocation13 + $0x8] sm:$0xf] %v696_v29 }
 0x4cb   :  { %v700_v33 = vpack.c.bf16 %v612_v32, %v609_v31 }
 0x4cd   :  { %701 = vst [vmem:[#allocation13] sm:$0xff] %v700_v33  }
 0x4ce   :  { %959 = shalt.err (!%p956_p10)
}
 0x4cf   :  { %s960_s22 = scalar_lea.hbm %s1187_s11, 192 }
 0x4d0   :  { %p961_p11 = scmp.ne.s32.totalorder %s1187_s11, %s960_s22  ;;  %p964_p12 = scmp.lt.u32.totalorder %s960_s22, %s1187_s11 }
 0x4d2   :  { %p966_p13 = pnand %p964_p12, %p961_p11 }
 0x4d4   :  { %969 = shalt.err (!%p966_p13)
}
 0x4d5   :  { %649 = dma.vmem_to_hbm [thread:$0]  %s644_s21, 192, %s1187_s11, [#allocation4], %s981_s27, %s981_s27, %s982_s28  }
 0x4d6   :  { %978 = dma.done.wait [#allocation4], 192  }
 0x4d7   :  { %979 = vsyncadd [#allocation4], 4294967104 }
 0x4d8   :  { %653 = vsyncpa [#allocation3], 1 }
 0x4d9   :  { %654 = vsyncpa [#allocation6], 1 }
 0x4da   :  { %655 = vsyncpa [#allocation9], 1 }
 0x4db   :  { %656 = vsyncpa [#allocation12], 1 }
 0x4dc   :  { %657 = vsyncpa [#allocation4], 1 }

</bundles_post_ra>
